<compile_context>
chip_gen: v6e
topology: v6e:2x2x1
jax: 0.10.0
libtpu: 0.0.40
codegen_flags: <defaults>
</compile_context>

<pallas_src>
import functools

import jax
import jax.numpy as jnp
from jax import lax
from jax.experimental import pallas as pl
from jax.experimental.pallas import tpu as pltpu

LANE = 128
DIN = 128      # padded (state_size + action_size) feature width
DH = 128       # padded hidden width (real hidden_size lives in lanes [0, H))
W5_ROWS = 8    # fc5 weight stored as an 8-sublane row block (row 0 is real)


def _round_up(x, m):
    return (x + m - 1) // m * m


def deep_critic_kernel(s_ref, a_ref, wxu_ref, ball_ref, whh_ref, w5_ref,
                       b5_ref, q_ref, xu_scratch):
    """One batch tile of the DeepCritic forward.

    s_ref   : (TB, S)       f32   state tile
    a_ref   : (TB, A)       f32   action tile
    wxu_ref : (DIN, 4*DH)   bf16  [W1^T | W2_xu^T | W3_xu^T | W4_xu^T], zero-padded
    ball_ref: (1, 4*DH)     f32   [b1 | b2 | b3 | b4], zero-padded
    whh_ref : (DH, 3*DH)    bf16  [W2_h^T | W3_h^T | W4_h^T], zero-padded
    w5_ref  : (8, DH)       bf16  row 0 = W5^T, rows 1..7 zero
    b5_ref  : (1,)          f32   SMEM scalar
    q_ref   : (1, TB)       f32   lane-dense Q row for this tile
    xu_scratch: (TB, DIN)   f32   VMEM scratch for the padded cat(state, action)
    """
    S = s_ref.shape[1]
    A = a_ref.shape[1]

    # Assemble the zero-padded, lane-aligned xu = cat(state, action) directly in
    # VMEM (no padded copy ever touches HBM).  Zero every step so megacore grid
    # splits never see stale padding lanes.
    xu_scratch[...] = jnp.zeros_like(xu_scratch)
    xu_scratch[:, 0:S] = s_ref[...].astype(xu_scratch.dtype)
    xu_scratch[:, S:S + A] = a_ref[...].astype(xu_scratch.dtype)
    xu = xu_scratch[...].astype(jnp.bfloat16)                       # (TB, DIN)

    # fc1 + the xu-halves of fc2..fc4 as one wide MXU dot + one fused bias add.
    xu_proj = jnp.dot(xu, wxu_ref[...],
                      preferred_element_type=jnp.float32) + ball_ref[...]

    h = jnp.maximum(xu_proj[:, 0:DH], 0.0)                          # relu(fc1(xu))
    for k in range(3):                                              # fc2..fc4
        wh = whh_ref[:, k * DH:(k + 1) * DH]
        pre = jnp.dot(h.astype(jnp.bfloat16), wh,
                      preferred_element_type=jnp.float32)
        h = jnp.maximum(pre + xu_proj[:, (k + 1) * DH:(k + 2) * DH], 0.0)

    # fc5, emitted lane-dense across the batch: (8, DH) x (TB, DH)^T -> (8, TB),
    # only row 0 is real.  HBM writeback is 4 B/row instead of 512 B/row.
    q8 = lax.dot_general(w5_ref[...], h.astype(jnp.bfloat16),
                         dimension_numbers=(((1,), (1,)), ((), ())),
                         preferred_element_type=jnp.float32)
    q_ref[...] = q8[0:1, :] + b5_ref[0]


@functools.partial(jax.jit, static_argnames=("block_b",))
def deep_critic_forward(state, action, params, *, block_b=1024):
    """Fused DeepCritic forward. Returns Q of shape (B, 1), float32."""
    B, S = state.shape
    A = action.shape[1]
    assert S + A <= DIN

    # Batch tile: multiple of 128 (keeps the (1, tb) output block legal when the
    # grid has > 1 step), big enough to amortize per-step overhead, and capped
    # so large batches produce >= 2 grid steps (v7x 2-TensorCore split).
    block_b = max(LANE, (block_b // LANE) * LANE)
    n128 = _round_up(B, LANE) // LANE
    tiles = n128 // 2 if n128 >= 2 else 1
    tb = max(LANE, min(block_b, tiles * LANE))
    bp = _round_up(B, tb)

    state_p = state.astype(jnp.float32)
    action_p = action.astype(jnp.float32)
    if bp != B:
        state_p = jnp.pad(state_p, ((0, bp - B), (0, 0)))
        action_p = jnp.pad(action_p, ((0, bp - B), (0, 0)))

    args = (state_p, action_p, params["wxu"], params["b_all"], params["whh"],
            params["w5"], params["b5"])

    def resident(shape):
        # Full-array block, constant index_map -> DMA'd once, resident in VMEM.
        return pl.BlockSpec(shape, lambda i: (0, 0))

    in_specs = [
        pl.BlockSpec((tb, S), lambda i: (i, 0)),     # streamed state tile
        pl.BlockSpec((tb, A), lambda i: (i, 0)),     # streamed action tile
        resident(params["wxu"].shape),
        resident(params["b_all"].shape),
        resident(params["whh"].shape),
        resident(params["w5"].shape),
        pl.BlockSpec(memory_space=pltpu.MemorySpace.SMEM),   # b5 scalar
    ]
    out_specs = pl.BlockSpec((1, tb), lambda i: (0, i))      # lane-dense Q row

    flops = 2 * bp * (DIN * 4 * DH + 3 * DH * DH + DH * W5_ROWS)
    bytes_accessed = int(bp * (S + A) * 4 + bp * 4 +
                         sum(int(a.size) * a.dtype.itemsize for a in args[2:]))

    q_row = pl.pallas_call(
        deep_critic_kernel,
        out_shape=jax.ShapeDtypeStruct((1, bp), jnp.float32),
        grid_spec=pltpu.PrefetchScalarGridSpec(
            num_scalar_prefetch=0,
            grid=(bp // tb,),
            in_specs=in_specs,
            out_specs=out_specs,
            scratch_shapes=[pltpu.VMEM((tb, DIN), jnp.float32)],
        ),
        compiler_params=pltpu.CompilerParams(
            dimension_semantics=("parallel",),
            vmem_limit_bytes=32 * 1024 * 1024,   # safe for v7x's 64 MiB VMEM
        ),
        cost_estimate=pl.CostEstimate(
            flops=flops, transcendentals=0, bytes_accessed=bytes_accessed),
    )(*args)

    return q_row[0, :B].reshape(B, 1)


def init_deep_critic_params(key, state_size, action_size, hidden_size=32,
                            init_w=0.003):
    """Mirrors DeepCritic.reset_parameters.

    The PyTorch hidden_init uses weight.size()[0] == out_features, so the
    hidden-layer limit is 1/sqrt(hidden_size).  Biases keep nn.Linear's default
    U(-1/sqrt(fan_in), 1/sqrt(fan_in)).  Returns (packed TPU params, raw f32
    params for the reference).
    """
    sa = state_size + action_size
    in_dim = hidden_size + sa
    ks = jax.random.split(key, 10)

    def unif(k_, shape, lim):
        return jax.random.uniform(k_, shape, jnp.float32, -lim, lim)

    lim_h = 1.0 / float(hidden_size) ** 0.5
    raw = {
        "w1": unif(ks[0], (sa, hidden_size), lim_h),
        "b1": unif(ks[1], (hidden_size,), 1.0 / float(sa) ** 0.5),
        "w2": unif(ks[2], (in_dim, hidden_size), lim_h),
        "b2": unif(ks[3], (hidden_size,), 1.0 / float(in_dim) ** 0.5),
        "w3": unif(ks[4], (in_dim, hidden_size), lim_h),
        "b3": unif(ks[5], (hidden_size,), 1.0 / float(in_dim) ** 0.5),
        "w4": unif(ks[6], (in_dim, hidden_size), lim_h),
        "b4": unif(ks[7], (hidden_size,), 1.0 / float(in_dim) ** 0.5),
        "w5": unif(ks[8], (hidden_size, 1), init_w),
        "b5": unif(ks[9], (1,), init_w),
    }
    return pack_params(raw, state_size, action_size, hidden_size), raw


def pack_params(raw, state_size, action_size, hidden_size):
    """Zero-pad / fuse weights into the 128-lane-aligned layout the kernel expects."""
    sa = state_size + action_size
    H = hidden_size
    f32, bf16 = jnp.float32, jnp.bfloat16

    # Fused xu-side weight: [fc1 | xu-half of fc2 | fc3 | fc4], each in a DH block.
    wxu = jnp.zeros((DIN, 4 * DH), f32)
    wxu = wxu.at[:sa, 0:H].set(raw["w1"])
    wxu = wxu.at[:sa, DH:DH + H].set(raw["w2"][H:, :])
    wxu = wxu.at[:sa, 2 * DH:2 * DH + H].set(raw["w3"][H:, :])
    wxu = wxu.at[:sa, 3 * DH:3 * DH + H].set(raw["w4"][H:, :])

    b_all = jnp.zeros((1, 4 * DH), f32)
    b_all = b_all.at[0, 0:H].set(raw["b1"])
    b_all = b_all.at[0, DH:DH + H].set(raw["b2"])
    b_all = b_all.at[0, 2 * DH:2 * DH + H].set(raw["b3"])
    b_all = b_all.at[0, 3 * DH:3 * DH + H].set(raw["b4"])

    # h-side weights of fc2..fc4 packed into one resident slab.
    whh = jnp.zeros((DH, 3 * DH), f32)
    whh = whh.at[:H, 0:H].set(raw["w2"][:H, :])
    whh = whh.at[:H, DH:DH + H].set(raw["w3"][:H, :])
    whh = whh.at[:H, 2 * DH:2 * DH + H].set(raw["w4"][:H, :])

    # fc5 as an 8-sublane row block (row 0 real) for the lane-dense output dot.
    w5 = jnp.zeros((W5_ROWS, DH), f32).at[0, :H].set(raw["w5"][:, 0])

    return {
        "wxu": wxu.astype(bf16),
        "b_all": b_all,
        "whh": whh.astype(bf16),
        "w5": w5.astype(bf16),
        "b5": raw["b5"].astype(f32).reshape((1,)),
    }


def deep_critic_ref(state, action, raw, mxu_dtype=jnp.bfloat16):
    """Pure-JAX reference of the PyTorch forward using the same bf16-in /
    f32-accumulate precision recipe as the kernel."""
    def lin(x, w, b):
        return jnp.dot(x.astype(mxu_dtype), w.astype(mxu_dtype),
                       preferred_element_type=jnp.float32) + b

    xu = jnp.concatenate([state, action], axis=1)
    h = jnp.maximum(lin(xu, raw["w1"], raw["b1"]), 0.0)
    h = jnp.maximum(lin(jnp.concatenate([h, xu], 1), raw["w2"], raw["b2"]), 0.0)
    h = jnp.maximum(lin(jnp.concatenate([h, xu], 1), raw["w3"], raw["b3"]), 0.0)
    h = jnp.maximum(lin(jnp.concatenate([h, xu], 1), raw["w4"], raw["b4"]), 0.0)
    return lin(h, raw["w5"], raw["b5"])


def deep_critic_ref_f32(state, action, raw):
    """Full-f32 PyTorch-semantics reference (loose sanity check for bf16 path)."""
    xu = jnp.concatenate([state, action], axis=1)
    h = jnp.maximum(xu @ raw["w1"] + raw["b1"], 0.0)
    h = jnp.maximum(jnp.concatenate([h, xu], 1) @ raw["w2"] + raw["b2"], 0.0)
    h = jnp.maximum(jnp.concatenate([h, xu], 1) @ raw["w3"] + raw["b3"], 0.0)
    h = jnp.maximum(jnp.concatenate([h, xu], 1) @ raw["w4"] + raw["b4"], 0.0)
    return h @ raw["w5"] + raw["b5"]


if __name__ == "__main__":
    key = jax.random.PRNGKey(0)
    k_param, k_state, k_action = jax.random.split(key, 3)

    B, STATE_SIZE, ACTION_SIZE, HIDDEN = 2, 16, 4, 32

    params, raw = init_deep_critic_params(k_param, STATE_SIZE, ACTION_SIZE, HIDDEN)
    state = jax.random.normal(k_state, (B, STATE_SIZE), jnp.float32)
    action = jax.random.normal(k_action, (B, ACTION_SIZE), jnp.float32)

    q = deep_critic_forward(state, action, params)
    q = jax.block_until_ready(q)
    assert q.shape == (B, 1)

    q_ref = deep_critic_ref(state, action, raw)        # matched-precision ref
    q_f32 = deep_critic_ref_f32(state, action, raw)    # PyTorch f32 semantics
    assert jnp.allclose(q, q_ref, atol=1e-3, rtol=1e-2), (q, q_ref)
    assert jnp.allclose(q, q_f32, atol=5e-2, rtol=5e-2), (q, q_f32)

    print("KERNEL_OK")
</pallas_src>

<mosaic_0001>
module attributes {stable_mosaic.version = 11 : i64} {
  func.func @deep_critic_kernel(%arg0: i32, %arg1: memref<128x16xf32, #tpu.memory_space<vmem>>, %arg2: memref<128x4xf32, #tpu.memory_space<vmem>>, %arg3: memref<128x512xbf16, #tpu.memory_space<vmem>>, %arg4: memref<1x512xf32, #tpu.memory_space<vmem>>, %arg5: memref<128x384xbf16, #tpu.memory_space<vmem>>, %arg6: memref<8x128xbf16, #tpu.memory_space<vmem>>, %arg7: memref<1xf32, #tpu.memory_space<smem>>, %arg8: memref<1x128xf32, #tpu.memory_space<vmem>>, %arg9: memref<128x128xf32, #tpu.memory_space<vmem>>) attributes {dimension_semantics = [#tpu.dimension_semantics<parallel>], iteration_bounds = array<i64: 1>, scalar_prefetch = 0 : i64, scratch_operands = 1 : i64, tpu.core_type = #tpu.core_type<tc>, window_params = [{transform_indices = @transform_0, window_bounds = array<i64: 128, 16>}, {transform_indices = @transform_1, window_bounds = array<i64: 128, 4>}, {pipeline_mode = #tpu.pipeline_mode<synchronous>, transform_indices = @transform_2, window_bounds = array<i64: 128, 512>}, {pipeline_mode = #tpu.pipeline_mode<synchronous>, transform_indices = @transform_3, window_bounds = array<i64: 1, 512>}, {pipeline_mode = #tpu.pipeline_mode<synchronous>, transform_indices = @transform_4, window_bounds = array<i64: 128, 384>}, {pipeline_mode = #tpu.pipeline_mode<synchronous>, transform_indices = @transform_5, window_bounds = array<i64: 8, 128>}, {transform_indices = @transform_6, window_bounds = array<i64: 1>}, {transform_indices = @transform_7, window_bounds = array<i64: 1, 128>}]} {
    %cst = arith.constant 0.000000e+00 : f32
    %0 = vector.broadcast %cst : f32 to vector<128x128xf32>
    %c0 = arith.constant 0 : index
    %c0_0 = arith.constant 0 : index
    %1 = vector.load %arg9[%c0, %c0_0] : memref<128x128xf32, #tpu.memory_space<vmem>>, vector<128x128xf32>
    tpu.vector_store %arg9[%c0, %c0_0], %0 {strides = array<i32>} : memref<128x128xf32, #tpu.memory_space<vmem>>, vector<128x128xf32>,
    %c0_1 = arith.constant 0 : index
    %c0_2 = arith.constant 0 : index
    %2 = vector.load %arg1[%c0_1, %c0_2] : memref<128x16xf32, #tpu.memory_space<vmem>>, vector<128x16xf32>
    %c0_3 = arith.constant 0 : index
    %c0_4 = arith.constant 0 : index
    %3 = vector.load %arg9[%c0_3, %c0_4] : memref<128x128xf32, #tpu.memory_space<vmem>>, vector<128x16xf32>
    tpu.vector_store %arg9[%c0_3, %c0_4], %2 {strides = array<i32>} : memref<128x128xf32, #tpu.memory_space<vmem>>, vector<128x16xf32>,
    %c0_5 = arith.constant 0 : index
    %c0_6 = arith.constant 0 : index
    %4 = vector.load %arg2[%c0_5, %c0_6] : memref<128x4xf32, #tpu.memory_space<vmem>>, vector<128x4xf32>
    %c0_7 = arith.constant 0 : index
    %c16 = arith.constant 16 : index
    %5 = vector.load %arg9[%c0_7, %c16] : memref<128x128xf32, #tpu.memory_space<vmem>>, vector<128x4xf32>
    tpu.vector_store %arg9[%c0_7, %c16], %4 {strides = array<i32>} : memref<128x128xf32, #tpu.memory_space<vmem>>, vector<128x4xf32>,
    %c0_8 = arith.constant 0 : index
    %c0_9 = arith.constant 0 : index
    %6 = vector.load %arg9[%c0_8, %c0_9] : memref<128x128xf32, #tpu.memory_space<vmem>>, vector<128x128xf32>
    %7 = arith.truncf %6 : vector<128x128xf32> to vector<128x128xbf16>
    %c0_10 = arith.constant 0 : index
    %c0_11 = arith.constant 0 : index
    %8 = vector.load %arg3[%c0_10, %c0_11] : memref<128x512xbf16, #tpu.memory_space<vmem>>, vector<128x512xbf16>
    %cst_12 = arith.constant dense<0.000000e+00> : vector<128x512xf32>
    %9 = tpu.matmul %7, %8, %cst_12 {dimension_numbers = #tpu.dot_dimension_numbers<[1], [0], [0], [1], [0, 0, 1, 1], [], []>} : vector<128x128xbf16>, vector<128x512xbf16>, vector<128x512xf32> -> vector<128x512xf32>
    %c0_13 = arith.constant 0 : index
    %c0_14 = arith.constant 0 : index
    %10 = vector.load %arg4[%c0_13, %c0_14] : memref<1x512xf32, #tpu.memory_space<vmem>>, vector<1x512xf32>
    %11 = vector.broadcast %10 : vector<1x512xf32> to vector<128x512xf32>
    %12 = arith.addf %9, %11 : vector<128x512xf32>
    %13 = vector.extract_strided_slice %12 {offsets = [0, 0], sizes = [128, 128], strides = [1, 1]} : vector<128x512xf32> to vector<128x128xf32>
    %cst_15 = arith.constant 0.000000e+00 : f32
    %14 = vector.broadcast %cst_15 : f32 to vector<128x128xf32>
    %15 = arith.maximumf %13, %14 : vector<128x128xf32>
    %c0_16 = arith.constant 0 : index
    %c0_17 = arith.constant 0 : index
    %16 = vector.load %arg5[%c0_16, %c0_17] : memref<128x384xbf16, #tpu.memory_space<vmem>>, vector<128x128xbf16>
    %17 = arith.truncf %15 : vector<128x128xf32> to vector<128x128xbf16>
    %cst_18 = arith.constant dense<0.000000e+00> : vector<128x128xf32>
    %18 = tpu.matmul %17, %16, %cst_18 {dimension_numbers = #tpu.dot_dimension_numbers<[1], [0], [0], [1], [0, 0, 1, 1], [], []>} : vector<128x128xbf16>, vector<128x128xbf16>, vector<128x128xf32> -> vector<128x128xf32>
    %19 = vector.extract_strided_slice %12 {offsets = [0, 128], sizes = [128, 128], strides = [1, 1]} : vector<128x512xf32> to vector<128x128xf32>
    %20 = arith.addf %18, %19 : vector<128x128xf32>
    %cst_19 = arith.constant 0.000000e+00 : f32
    %21 = vector.broadcast %cst_19 : f32 to vector<128x128xf32>
    %22 = arith.maximumf %20, %21 : vector<128x128xf32>
    %c0_20 = arith.constant 0 : index
    %c128 = arith.constant 128 : index
    %23 = vector.load %arg5[%c0_20, %c128] : memref<128x384xbf16, #tpu.memory_space<vmem>>, vector<128x128xbf16>
    %24 = arith.truncf %22 : vector<128x128xf32> to vector<128x128xbf16>
    %cst_21 = arith.constant dense<0.000000e+00> : vector<128x128xf32>
    %25 = tpu.matmul %24, %23, %cst_21 {dimension_numbers = #tpu.dot_dimension_numbers<[1], [0], [0], [1], [0, 0, 1, 1], [], []>} : vector<128x128xbf16>, vector<128x128xbf16>, vector<128x128xf32> -> vector<128x128xf32>
    %26 = vector.extract_strided_slice %12 {offsets = [0, 256], sizes = [128, 128], strides = [1, 1]} : vector<128x512xf32> to vector<128x128xf32>
    %27 = arith.addf %25, %26 : vector<128x128xf32>
    %cst_22 = arith.constant 0.000000e+00 : f32
    %28 = vector.broadcast %cst_22 : f32 to vector<128x128xf32>
    %29 = arith.maximumf %27, %28 : vector<128x128xf32>
    %c0_23 = arith.constant 0 : index
    %c256 = arith.constant 256 : index
    %30 = vector.load %arg5[%c0_23, %c256] : memref<128x384xbf16, #tpu.memory_space<vmem>>, vector<128x128xbf16>
    %31 = arith.truncf %29 : vector<128x128xf32> to vector<128x128xbf16>
    %cst_24 = arith.constant dense<0.000000e+00> : vector<128x128xf32>
    %32 = tpu.matmul %31, %30, %cst_24 {dimension_numbers = #tpu.dot_dimension_numbers<[1], [0], [0], [1], [0, 0, 1, 1], [], []>} : vector<128x128xbf16>, vector<128x128xbf16>, vector<128x128xf32> -> vector<128x128xf32>
    %33 = vector.extract_strided_slice %12 {offsets = [0, 384], sizes = [128, 128], strides = [1, 1]} : vector<128x512xf32> to vector<128x128xf32>
    %34 = arith.addf %32, %33 : vector<128x128xf32>
    %cst_25 = arith.constant 0.000000e+00 : f32
    %35 = vector.broadcast %cst_25 : f32 to vector<128x128xf32>
    %36 = arith.maximumf %34, %35 : vector<128x128xf32>
    %c0_26 = arith.constant 0 : index
    %c0_27 = arith.constant 0 : index
    %37 = vector.load %arg6[%c0_26, %c0_27] : memref<8x128xbf16, #tpu.memory_space<vmem>>, vector<8x128xbf16>
    %38 = arith.truncf %36 : vector<128x128xf32> to vector<128x128xbf16>
    %cst_28 = arith.constant dense<0.000000e+00> : vector<8x128xf32>
    %39 = tpu.matmul %37, %38, %cst_28 {dimension_numbers = #tpu.dot_dimension_numbers<[1], [1], [0], [0], [0, 0, 1, 0], [], []>} : vector<8x128xbf16>, vector<128x128xbf16>, vector<8x128xf32> -> vector<8x128xf32>
    %40 = vector.extract_strided_slice %39 {offsets = [0, 0], sizes = [1, 128], strides = [1, 1]} : vector<8x128xf32> to vector<1x128xf32>
    %c0_29 = arith.constant 0 : index
    %41 = memref.load %arg7[%c0_29] : memref<1xf32, #tpu.memory_space<smem>>
    %42 = vector.broadcast %41 : f32 to vector<1x128xf32>
    %43 = arith.addf %40, %42 : vector<1x128xf32>
    %c0_30 = arith.constant 0 : index
    %c0_31 = arith.constant 0 : index
    %44 = vector.load %arg8[%c0_30, %c0_31] : memref<1x128xf32, #tpu.memory_space<vmem>>, vector<1x128xf32>
    tpu.vector_store %arg8[%c0_30, %c0_31], %43 {strides = array<i32>} : memref<1x128xf32, #tpu.memory_space<vmem>>, vector<1x128xf32>,
    return
  }
  func.func @transform_0(%arg0: i32) -> (i32, i32) {
    %c0_i32 = arith.constant 0 : i32
    %c0_i32_0 = arith.constant 0 : i32
    return %arg0, %c0_i32 : i32, i32
  }
  func.func @transform_1(%arg0: i32) -> (i32, i32) {
    %c0_i32 = arith.constant 0 : i32
    %c0_i32_0 = arith.constant 0 : i32
    return %arg0, %c0_i32 : i32, i32
  }
  func.func @transform_2(%arg0: i32) -> (i32, i32) {
    %c0_i32 = arith.constant 0 : i32
    %c0_i32_0 = arith.constant 0 : i32
    %c0_i32_1 = arith.constant 0 : i32
    return %c0_i32, %c0_i32_0 : i32, i32
  }
  func.func @transform_3(%arg0: i32) -> (i32, i32) {
    %c0_i32 = arith.constant 0 : i32
    %c0_i32_0 = arith.constant 0 : i32
    %c0_i32_1 = arith.constant 0 : i32
    return %c0_i32, %c0_i32_0 : i32, i32
  }
  func.func @transform_4(%arg0: i32) -> (i32, i32) {
    %c0_i32 = arith.constant 0 : i32
    %c0_i32_0 = arith.constant 0 : i32
    %c0_i32_1 = arith.constant 0 : i32
    return %c0_i32, %c0_i32_0 : i32, i32
  }
  func.func @transform_5(%arg0: i32) -> (i32, i32) {
    %c0_i32 = arith.constant 0 : i32
    %c0_i32_0 = arith.constant 0 : i32
    %c0_i32_1 = arith.constant 0 : i32
    return %c0_i32, %c0_i32_0 : i32, i32
  }
  func.func @transform_6(%arg0: i32) -> i32 {
    %c0_i32 = arith.constant 0 : i32
    %c0_i32_0 = arith.constant 0 : i32
    return %c0_i32 : i32
  }
  func.func @transform_7(%arg0: i32) -> (i32, i32) {
    %c0_i32 = arith.constant 0 : i32
    %c0_i32_0 = arith.constant 0 : i32
    return %c0_i32, %arg0 : i32, i32
  }
}

</mosaic_0001>

<bundles_post_ra>
// kernel: deep_critic_forward.1
= control target key start
LH: loop header
LB: loop body
LE: loop exit
PB: predicated region body
PF: predicated region fallthrough
CT: control target
= control target key end

     0   :  { %13 = vsyncpa [#allocation5], 0  ;;  %s1611_s24 = smov [#allocation4]   ;;  %s2134_s0 = inlined_call_operand.vmem [shape: f32[128,16], index: 0, kind: input, shape index: {}]   ;;  %s2135_s1 = inlined_call_operand.vmem [shape: f32[128,4], index: 1, kind: input, shape index: {}]   ;;  %s2136_s2 = inlined_call_operand.vmem [shape: bf16[128,512], index: 2, kind: input, shape index: {}]   ;;  %s2137_s3 = inlined_call_operand.vmem [shape: f32[1,512], index: 3, kind: input, shape index: {}]   ;;  %s2138_s4 = inlined_call_operand.hbm [shape: bf16[128,384], index: 4, kind: input, shape index: {}]   ;;  %s2139_s5 = inlined_call_operand.vmem [shape: bf16[8,128], index: 5, kind: input, shape index: {}]   ;;  %s2140_s6 = inlined_call_operand.<no memory space> [shape: f32[1], index: 6, kind: input, shape index: {}]   ;;  %s2141_s7 = inlined_call_operand.vmem [shape: f32[1,128], index: 7, kind: output, shape index: {}]  }
   0x1   :  { %s27_s25 = sshll.u32 %s1611_s24, 4  ;;  %s28_s25 = int_to_ptr.vmem [resolvable:$true] %s27_s25 }
   0x2   :  { %s1597_s26 = scalar_lea.vmem %s28_s25, 3072  ;;  %p1602_p1 = scmp.lt.s32.totalorder %s28_s25, %s28_s25 }
   0x3   :  { %p1598_p0 = scmp.ne.s32.totalorder %s28_s25, %s1597_s26  ;;  %p1603_p2 = scmp.lt.s32.totalorder %s1597_s26, %s1597_s26 }
   0x5   :  { %p1604_p3 = por %p1603_p2, %p1602_p1 }
   0x7   :  { %p1605_p4 = pnand %p1604_p3, %p1598_p0 }
   0x9   :  { %1608 = shalt.err (!%p1605_p4)
}
   0xa   :  { %s1612_s27 = smov 192   ;;  %s1613_s28 = smov 12  }
   0xb   :  { %33 = dma.hbm_to_vmem [thread:$0]  %s2138_s4, 3072, %s28_s25, [#allocation5], %s1612_s27, %s1612_s27, %s1613_s28  }
   0xc   :  { %1609 = dma.done.wait [#allocation5], 3072  }
   0xd   :  { %1610 = vsyncadd [#allocation5], 4294964224  ;;  %v1614_v0 = vmov 0.0   ;;  %v1615_v1 = vmov 0   ;;  %v91_v2 = vld [vmem:[%s2135_s1] sm:$0xff]  ;;  %v93_v3 = vld [vmem:[%s2135_s1 + $0x10] sm:$0xff] }
   0xe   :  { %42 = vst [vmem:[#allocation2] sm:$0xff] %v1614_v0  ;;  %43 = vst [vmem:[#allocation2 + $0x8] sm:$0xff] %v1614_v0  ;;  %458 = vmatprep.mubr.bf16.mxu0 %v1615_v1  ;;  %571 = vmatprep.mubr.bf16.mxu1 %v1615_v1  ;;  %s1616_s11 = smov 16   ;;  %v92_v4 = vld [vmem:[%s2135_s1 + $0x8] sm:$0xff]  ;;  %v94_v5 = vld [vmem:[%s2135_s1 + $0x18] sm:$0xff]  ;;  %vm74_vm0 = vcmask 130048  }
   0xf   :  { %44 = vst [vmem:[#allocation2 + $0x10] sm:$0xff] %v1614_v0  ;;  %45 = vst [vmem:[#allocation2 + $0x18] sm:$0xff] %v1614_v0  ;;  %123 = vrot.lane.b32.xlu0 %v91_v2, %s1616_s11  ;;  %127 = vrot.lane.b32.xlu1 %v93_v3, %s1616_s11  ;;  %v96_v6 = vld [vmem:[%s2135_s1 + $0x28] sm:$0xff]  ;;  %v95_v7 = vld [vmem:[%s2135_s1 + $0x20] sm:$0xff]  ;;  %vm171_vm1 = vcmask 162944   ;;  %vm1617_vm2 = vmmov 0  }
  0x10   :  { %46 = vst [vmem:[#allocation2 + $0x20] sm:$0xff] %v1614_v0  ;;  %47 = vst [vmem:[#allocation2 + $0x28] sm:$0xff] %v1614_v0  ;;  %v1517_v8 = vld [vmem:[%s2136_s2 + $0xe4] ss:$16 sps:$4 sm:$0xff]   ;;  %v1519_v9 = vld [vmem:[%s2136_s2 + $0xec] ss:$16 sps:$4 sm:$0xff]  }
  0x11   :  { %48 = vst [vmem:[#allocation2 + $0x30] sm:$0xff] %v1614_v0  ;;  %49 = vst [vmem:[#allocation2 + $0x38] sm:$0xff] %v1614_v0  ;;  %v98_v10 = vld [vmem:[%s2135_s1 + $0x38] sm:$0xff]  ;;  %v97_v11 = vld [vmem:[%s2135_s1 + $0x30] sm:$0xff]  ;;  %426 = vmatprep.subr.bf16.mxu0 %v1517_v8  ;;  %539 = vmatprep.subr.bf16.mxu1 %v1519_v9 }
  0x12   :  { %50 = vst [vmem:[#allocation2 + $0x40] sm:$0xff] %v1614_v0  ;;  %51 = vst [vmem:[#allocation2 + $0x48] sm:$0xff] %v1614_v0  ;;  %v1521_v12 = vld [vmem:[%s2136_s2 + $0xe0] ss:$16 sps:$4 sm:$0xff]   ;;  %v1522_v13 = vld [vmem:[%s2136_s2 + $0xe8] ss:$16 sps:$4 sm:$0xff]  }
  0x13   :  { %52 = vst [vmem:[#allocation2 + $0x50] sm:$0xff] %v1614_v0  ;;  %53 = vst [vmem:[#allocation2 + $0x58] sm:$0xff] %v1614_v0  ;;  %125 = vrot.lane.b32.xlu0 %v92_v4, %s1616_s11  ;;  %129 = vrot.lane.b32.xlu1 %v94_v5, %s1616_s11  ;;  %v1523_v14 = vld [vmem:[%s2136_s2 + $0xc4] ss:$16 sps:$4 sm:$0xff]   ;;  %v1525_v15 = vld [vmem:[%s2136_s2 + $0xcc] ss:$16 sps:$4 sm:$0xff]  }
  0x14   :  { %54 = vst [vmem:[#allocation2 + $0x60] sm:$0xff] %v1614_v0  ;;  %55 = vst [vmem:[#allocation2 + $0x68] sm:$0xff] %v1614_v0  ;;  %427 = vmatpush1.bf16.msra.mxu0 %v1521_v12  ;;  %540 = vmatpush1.bf16.msra.mxu1 %v1522_v13  ;;  %v1527_v16 = vld [vmem:[%s2136_s2 + $0xc0] ss:$16 sps:$4 sm:$0xff]   ;;  %v1528_v17 = vld [vmem:[%s2136_s2 + $0xc8] ss:$16 sps:$4 sm:$0xff]  }
  0x15   :  { %56 = vst [vmem:[#allocation2 + $0x70] sm:$0xff] %v1614_v0  ;;  %57 = vst [vmem:[#allocation2 + $0x78] sm:$0xff] %v1614_v0  ;;  %428 = vmatprep.subr.bf16.mxu0 %v1523_v14  ;;  %v100_v18 = vld [vmem:[%s2135_s1 + $0x48] sm:$0xff]  ;;  %v99_v19 = vld [vmem:[%s2135_s1 + $0x40] sm:$0xff]  ;;  %541 = vmatprep.subr.bf16.mxu1 %v1525_v15 }
  0x16   :  { %v1529_v20 = vld [vmem:[%s2136_s2 + $0xa4] ss:$16 sps:$4 sm:$0xff]   ;;  %v1531_v21 = vld [vmem:[%s2136_s2 + $0xac] ss:$16 sps:$4 sm:$0xff]   ;;  %v1533_v22 = vld [vmem:[%s2136_s2 + $0xa0] ss:$16 sps:$4 sm:$0xff]  }
  0x17   :  { %133 = vrot.lane.b32.xlu1 %v96_v6, %s1616_s11  ;;  %131 = vrot.lane.b32.xlu0 %v95_v7, %s1616_s11  ;;  %v1534_v23 = vld [vmem:[%s2136_s2 + $0xa8] ss:$16 sps:$4 sm:$0xff]   ;;  %v1535_v24 = vld [vmem:[%s2136_s2 + $0x84] ss:$16 sps:$4 sm:$0xff]  }
  0x18   :  { %429 = vmatpush1.bf16.msra.mxu0 %v1527_v16  ;;  %542 = vmatpush1.bf16.msra.mxu1 %v1528_v17  ;;  %v102_v25 = vld [vmem:[%s2135_s1 + $0x58] sm:$0xff]  ;;  %v101_v27 = vld [vmem:[%s2135_s1 + $0x50] sm:$0xff]  ;;  %v104_v31 = vld [vmem:[%s2135_s1 + $0x68] sm:$0xff] }
  0x19   :  { %430 = vmatprep.subr.bf16.mxu0 %v1529_v20  ;;  %543 = vmatprep.subr.bf16.mxu1 %v1531_v21  ;;  %v1537_v26 = vld [vmem:[%s2136_s2 + $0x8c] ss:$16 sps:$4 sm:$0xff]   ;;  %v1539_v28 = vld [vmem:[%s2136_s2 + $0x80] ss:$16 sps:$4 sm:$0xff]   ;;  %v1540_v29 = vld [vmem:[%s2136_s2 + $0x88] ss:$16 sps:$4 sm:$0xff]  }
  0x1a   :  { %v1541_v30 = vld [vmem:[%s2136_s2 + $0x64] ss:$16 sps:$4 sm:$0xff]   ;;  %v1543_v33 = vld [vmem:[%s2136_s2 + $0x6c] ss:$16 sps:$4 sm:$0xff]   ;;  %v1545_v35 = vld [vmem:[%s2136_s2 + $0x60] ss:$16 sps:$4 sm:$0xff]  }
  0x1b   :  { %137 = vrot.lane.b32.xlu1 %v98_v10, %s1616_s11  ;;  %135 = vrot.lane.b32.xlu0 %v97_v11, %s1616_s11  ;;  %v103_v32 = vld [vmem:[%s2135_s1 + $0x60] sm:$0xff]  ;;  %v1546_v36 = vld [vmem:[%s2136_s2 + $0x68] ss:$16 sps:$4 sm:$0xff]   ;;  %v1566_v16 = vld [vmem:[#allocation4 + $0x90] ss:$12 sps:$4 sm:$0xff]  }
  0x1c   :  { %431 = vmatpush1.bf16.msra.mxu0 %v1533_v22  ;;  %544 = vmatpush1.bf16.msra.mxu1 %v1534_v23  ;;  %v58_v34 = vld [vmem:[%s2134_s0] sm:$0xff]  ;;  %v1549_v38 = vld [vmem:[%s2136_s2 + $0x4c] ss:$16 sps:$4 sm:$0xff]   ;;  %v60_v39 = vld [vmem:[%s2134_s0 + $0x10] sm:$0xff] }
  0x1d   :  { %432 = vmatprep.subr.bf16.mxu0 %v1535_v24  ;;  %545 = vmatprep.subr.bf16.mxu1 %v1537_v26  ;;  %75 = vst.msk [vmem:[#allocation2] sm:$0xff] %vm74_vm0, %v58_v34  ;;  %v1547_v37 = vld [vmem:[%s2136_s2 + $0x44] ss:$16 sps:$4 sm:$0xff]   ;;  %v106_v40 = vld [vmem:[%s2135_s1 + $0x78] sm:$0xff]  ;;  %77 = vst.msk [vmem:[#allocation2 + $0x10] sm:$0xff] %vm74_vm0, %v60_v39 }
  0x1e   :  { %v105_v41 = vld [vmem:[%s2135_s1 + $0x70] sm:$0xff]  ;;  %v59_v42 = vld [vmem:[%s2134_s0 + $0x8] sm:$0xff]  ;;  %v61_v47 = vld [vmem:[%s2134_s0 + $0x18] sm:$0xff] }
  0x1f   :  { %141 = vrot.lane.b32.xlu1 %v100_v18, %s1616_s11  ;;  %139 = vrot.lane.b32.xlu0 %v99_v19, %s1616_s11  ;;  %v1551_v43 = vld [vmem:[%s2136_s2 + $0x40] ss:$16 sps:$4 sm:$0xff]   ;;  %76 = vst.msk [vmem:[#allocation2 + $0x8] sm:$0xff] %vm74_vm0, %v59_v42  ;;  %v1552_v44 = vld [vmem:[%s2136_s2 + $0x48] ss:$16 sps:$4 sm:$0xff]   ;;  %78 = vst.msk [vmem:[#allocation2 + $0x18] sm:$0xff] %vm74_vm0, %v61_v47 }
  0x20   :  { %433 = vmatpush1.bf16.msra.mxu0 %v1539_v28  ;;  %546 = vmatpush1.bf16.msra.mxu1 %v1540_v29  ;;  %v1553_v45 = vld [vmem:[%s2136_s2 + $0x24] ss:$16 sps:$4 sm:$0xff]   ;;  %v1555_v46 = vld [vmem:[%s2136_s2 + $0x2c] ss:$16 sps:$4 sm:$0xff]   ;;  %v1557_v48 = vld [vmem:[%s2136_s2 + $0x20] ss:$16 sps:$4 sm:$0xff]  }
  0x21   :  { %434 = vmatprep.subr.bf16.mxu0 %v1541_v30  ;;  %547 = vmatprep.subr.bf16.mxu1 %v1543_v33  ;;  %v1558_v49 = vld [vmem:[%s2136_s2 + $0x28] ss:$16 sps:$4 sm:$0xff]   ;;  %v1559_v50 = vld [vmem:[%s2136_s2 + $0x4] ss:$16 sps:$4 sm:$0xff]   ;;  %v1561_v51 = vld [vmem:[%s2136_s2 + $0xc] ss:$16 sps:$4 sm:$0xff]  }
  0x22   :  { %v63_v52 = vld [vmem:[%s2134_s0 + $0x28] sm:$0xff]  ;;  %v62_v53 = vld [vmem:[%s2134_s0 + $0x20] sm:$0xff]  ;;  %v65_v54 = vld [vmem:[%s2134_s0 + $0x38] sm:$0xff] }
  0x23   :  { %145 = vrot.lane.b32.xlu1 %v102_v25, %s1616_s11  ;;  %143 = vrot.lane.b32.xlu0 %v101_v27, %s1616_s11  ;;  %80 = vst.msk [vmem:[#allocation2 + $0x28] sm:$0xff] %vm74_vm0, %v63_v52  ;;  %v64_v55 = vld [vmem:[%s2134_s0 + $0x30] sm:$0xff]  ;;  %79 = vst.msk [vmem:[#allocation2 + $0x20] sm:$0xff] %vm74_vm0, %v62_v53  ;;  %v67_v57 = vld [vmem:[%s2134_s0 + $0x48] sm:$0xff] }
  0x24   :  { %435 = vmatpush1.bf16.msra.mxu0 %v1545_v35  ;;  %548 = vmatpush1.bf16.msra.mxu1 %v1546_v36  ;;  %v1563_v56 = vld [vmem:[%s2136_s2] ss:$16 sps:$4 sm:$0xff]   ;;  %82 = vst.msk [vmem:[#allocation2 + $0x38] sm:$0xff] %vm74_vm0, %v65_v54  ;;  %81 = vst.msk [vmem:[#allocation2 + $0x30] sm:$0xff] %vm74_vm0, %v64_v55  ;;  %v69_v59 = vld [vmem:[%s2134_s0 + $0x58] sm:$0xff] }
  0x25   :  { %436 = vmatprep.subr.bf16.mxu0 %v1547_v37  ;;  %549 = vmatprep.subr.bf16.mxu1 %v1549_v38  ;;  %v66_v58 = vld [vmem:[%s2134_s0 + $0x40] sm:$0xff]  ;;  %v1564_v60 = vld [vmem:[%s2136_s2 + $0x8] ss:$16 sps:$4 sm:$0xff]   ;;  %84 = vst.msk [vmem:[#allocation2 + $0x48] sm:$0xff] %vm74_vm0, %v67_v57  ;;  %86 = vst.msk [vmem:[#allocation2 + $0x58] sm:$0xff] %vm74_vm0, %v69_v59 }
  0x26   :  { %83 = vst.msk [vmem:[#allocation2 + $0x40] sm:$0xff] %vm74_vm0, %v66_v58  ;;  %v68_v61 = vld [vmem:[%s2134_s0 + $0x50] sm:$0xff]  ;;  %v71_v62 = vld [vmem:[%s2134_s0 + $0x68] sm:$0xff]  ;;  %v70_v63 = vld [vmem:[%s2134_s0 + $0x60] sm:$0xff] }
  0x27   :  { %149 = vrot.lane.b32.xlu1 %v104_v31, %s1616_s11  ;;  %147 = vrot.lane.b32.xlu0 %v103_v32, %s1616_s11  ;;  %85 = vst.msk [vmem:[#allocation2 + $0x50] sm:$0xff] %vm74_vm0, %v68_v61  ;;  %88 = vst.msk [vmem:[#allocation2 + $0x68] sm:$0xff] %vm74_vm0, %v71_v62  ;;  %v73_v2 = vld [vmem:[%s2134_s0 + $0x78] sm:$0xff]  ;;  %v72_v3 = vld [vmem:[%s2134_s0 + $0x70] sm:$0xff] }
  0x28   :  { %437 = vmatpush1.bf16.msra.mxu0 %v1551_v43  ;;  %550 = vmatpush1.bf16.msra.mxu1 %v1552_v44  ;;  %87 = vst.msk [vmem:[#allocation2 + $0x60] sm:$0xff] %vm74_vm0, %v70_v63  ;;  %90 = vst.msk [vmem:[#allocation2 + $0x78] sm:$0xff] %vm74_vm0, %v73_v2  ;;  %v1565_v4 = vld [vmem:[#allocation4 + $0xa8] ss:$12 sps:$4 sm:$0xff]   ;;  %v1567_v21 = vld [vmem:[#allocation4 + $0x78] ss:$12 sps:$4 sm:$0xff]  }
  0x29   :  { %438 = vmatprep.subr.bf16.mxu0 %v1553_v45  ;;  %551 = vmatprep.subr.bf16.mxu1 %v1555_v46  ;;  %89 = vst.msk [vmem:[#allocation2 + $0x70] sm:$0xff] %vm74_vm0, %v72_v3  ;;  %v1568_v25 = vld [vmem:[#allocation4 + $0x60] ss:$12 sps:$4 sm:$0xff]   ;;  %v1576_v54 = vld [vmem:[#allocation4 + $0x64] ss:$12 sps:$4 sm:$0xff]  }
  0x2a   :  { %v1573_v52 = vld [vmem:[#allocation4 + $0xac] ss:$12 sps:$4 sm:$0xff]   ;;  %v1574_v53 = vld [vmem:[#allocation4 + $0x94] ss:$12 sps:$4 sm:$0xff]  }
  0x2b   :  { %153 = vrot.lane.b32.xlu1 %v106_v40, %s1616_s11  ;;  %151 = vrot.lane.b32.xlu0 %v105_v41, %s1616_s11  ;;  %v1577_v55 = vld [vmem:[#allocation4 + $0x4c] ss:$12 sps:$4 sm:$0xff]   ;;  %v1939_v59 = vld [vmem:[%s2137_s3] sm:$0xf] }
  0x2c   :  { %439 = vmatpush1.bf16.msra.mxu0 %v1557_v48  ;;  %552 = vmatpush1.bf16.msra.mxu1 %v1558_v49  ;;  %v1569_v48 = vld [vmem:[#allocation4 + $0x48] ss:$12 sps:$4 sm:$0xff]   ;;  %v1570_v49 = vld [vmem:[#allocation4 + $0x30] ss:$12 sps:$4 sm:$0xff]  }
  0x2d   :  { %440 = vmatprep.subr.bf16.mxu0 %v1559_v50  ;;  %553 = vmatprep.subr.bf16.mxu1 %v1561_v51  ;;  %v1571_v50 = vld [vmem:[#allocation4 + $0x18] ss:$12 sps:$4 sm:$0xff]   ;;  %v1572_v51 = vld [vmem:[#allocation4] ss:$12 sps:$4 sm:$0xff]  }
  0x30   :  { %441 = vmatpush1.bf16.msra.mxu0 %v1563_v56  ;;  %554 = vmatpush1.bf16.msra.mxu1 %v1564_v60  ;;  %v246_v56 = vlaneseq }
  0x31   :  { %1394 = vmatprep.subr.bf16.mxu0 %v1565_v4  ;;  %1426 = vmatprep.subr.bf16.mxu1 %v1573_v52 }
  0x32   :  { %v1933_v57 = vshrl.u32 %v246_v56, 7 }
  0x34   :  { %v248_v58 = vsub.s32 0, %v1933_v57 }
  0x36   :  { %v1942_v60 = vrot.slane %v1939_v59, %v248_v58 }
  0x81   :  { %v124_v5 = vpop.permute.xlu0 %123  ;;  %v128_v6 = vpop.permute.xlu1 %127 }
  0x82   :  { %172 = vst.msk [vmem:[#allocation2] sm:$0xff] %vm171_vm1, %v124_v5  ;;  %174 = vst.msk [vmem:[#allocation2 + $0x10] sm:$0xff] %vm171_vm1, %v128_v6 }
  0x85   :  { %v126_v7 = vpop.permute.xlu0 %125  ;;  %v130_v8 = vpop.permute.xlu1 %129 }
  0x86   :  { %173 = vst.msk [vmem:[#allocation2 + $0x8] sm:$0xff] %vm171_vm1, %v126_v7  ;;  %175 = vst.msk [vmem:[#allocation2 + $0x18] sm:$0xff] %vm171_vm1, %v130_v8 }
  0x89   :  { %v134_v9 = vpop.permute.xlu1 %133  ;;  %v132_v10 = vpop.permute.xlu0 %131  ;;  %v188_v11 = vld [vmem:[#allocation2] sm:$0xff]  ;;  %v190_v19 = vld [vmem:[#allocation2 + $0x10] sm:$0xff] }
  0x8a   :  { %177 = vst.msk [vmem:[#allocation2 + $0x28] sm:$0xff] %vm171_vm1, %v134_v9  ;;  %176 = vst.msk [vmem:[#allocation2 + $0x20] sm:$0xff] %vm171_vm1, %v132_v10 }
  0x8d   :  { %v189_v12 = vld [vmem:[#allocation2 + $0x8] sm:$0xff]  ;;  %v138_v13 = vpop.permute.xlu1 %137  ;;  %v136_v14 = vpop.permute.xlu0 %135  ;;  %v191_v20 = vld [vmem:[#allocation2 + $0x18] sm:$0xff] }
  0x8e   :  { %v204_v15 = vpack.c.bf16 %v189_v12, %v188_v11  ;;  %179 = vst.msk [vmem:[#allocation2 + $0x38] sm:$0xff] %vm171_vm1, %v138_v13  ;;  %178 = vst.msk [vmem:[#allocation2 + $0x30] sm:$0xff] %vm171_vm1, %v136_v14  ;;  %v205_v24 = vpack.c.bf16 %v191_v20, %v190_v19 }
  0x90   :  { %459 = vmatmul.mubr.bf16.vlgmr.msra.gmra.mxu0 %v204_v15  ;;  %572 = vmatmul.mubr.bf16.vlgmr.msra.gmra.mxu1 %v204_v15 }
  0x91   :  { %468 = vmatprep.mubr.bf16.mxu0 %v1615_v1  ;;  %581 = vmatprep.mubr.bf16.mxu1 %v1615_v1  ;;  %v142_v17 = vpop.permute.xlu1 %141  ;;  %v140_v18 = vpop.permute.xlu0 %139  ;;  %v192_v26 = vld [vmem:[#allocation2 + $0x20] sm:$0xff]  ;;  %v193_v27 = vld [vmem:[#allocation2 + $0x28] sm:$0xff] }
  0x92   :  { %181 = vst.msk [vmem:[#allocation2 + $0x48] sm:$0xff] %vm171_vm1, %v142_v17  ;;  %180 = vst.msk [vmem:[#allocation2 + $0x40] sm:$0xff] %vm171_vm1, %v140_v18  ;;  %1395 = vmatpush3.bf16.msra.mxu0 %v1565_v4  ;;  %v206_v30 = vpack.c.bf16 %v193_v27, %v192_v26  ;;  %1427 = vmatpush3.bf16.msra.mxu1 %v1573_v52 }
  0x93   :  { %1396 = vmatprep.subr.bf16.mxu0 %v1566_v16  ;;  %1428 = vmatprep.subr.bf16.mxu1 %v1574_v53 }
  0x95   :  { %v146_v22 = vpop.permute.xlu1 %145  ;;  %v144_v23 = vpop.permute.xlu0 %143  ;;  %v194_v33 = vld [vmem:[#allocation2 + $0x30] sm:$0xff]  ;;  %v195_v34 = vld [vmem:[#allocation2 + $0x38] sm:$0xff] }
  0x96   :  { %183 = vst.msk [vmem:[#allocation2 + $0x58] sm:$0xff] %vm171_vm1, %v146_v22  ;;  %182 = vst.msk [vmem:[#allocation2 + $0x50] sm:$0xff] %vm171_vm1, %v144_v23  ;;  %1397 = vmatpush3.bf16.msra.mxu0 %v1566_v16  ;;  %v207_v35 = vpack.c.bf16 %v195_v34, %v194_v33  ;;  %1429 = vmatpush3.bf16.msra.mxu1 %v1574_v53 }
  0x97   :  { %1398 = vmatprep.subr.bf16.mxu0 %v1567_v21 }
  0x98   :  { %469 = vmatmul.mubr.bf16.gmra.mxu0 %v205_v24  ;;  %582 = vmatmul.mubr.bf16.gmra.mxu1 %v205_v24 }
  0x99   :  { %478 = vmatprep.mubr.bf16.mxu0 %v1615_v1  ;;  %591 = vmatprep.mubr.bf16.mxu1 %v1615_v1  ;;  %v150_v28 = vpop.permute.xlu1 %149  ;;  %v148_v29 = vpop.permute.xlu0 %147  ;;  %v196_v36 = vld [vmem:[#allocation2 + $0x40] sm:$0xff]  ;;  %v197_v37 = vld [vmem:[#allocation2 + $0x48] sm:$0xff] }
  0x9a   :  { %185 = vst.msk [vmem:[#allocation2 + $0x68] sm:$0xff] %vm171_vm1, %v150_v28  ;;  %184 = vst.msk [vmem:[#allocation2 + $0x60] sm:$0xff] %vm171_vm1, %v148_v29  ;;  %1399 = vmatpush3.bf16.msra.mxu0 %v1567_v21  ;;  %v208_v38 = vpack.c.bf16 %v197_v37, %v196_v36 }
  0x9b   :  { %1400 = vmatprep.subr.bf16.mxu0 %v1568_v25 }
  0x9d   :  { %v154_v31 = vpop.permute.xlu1 %153  ;;  %v152_v32 = vpop.permute.xlu0 %151  ;;  %v198_v39 = vld [vmem:[#allocation2 + $0x50] sm:$0xff]  ;;  %v199_v40 = vld [vmem:[#allocation2 + $0x58] sm:$0xff] }
  0x9e   :  { %187 = vst.msk [vmem:[#allocation2 + $0x78] sm:$0xff] %vm171_vm1, %v154_v31  ;;  %186 = vst.msk [vmem:[#allocation2 + $0x70] sm:$0xff] %vm171_vm1, %v152_v32  ;;  %1401 = vmatpush3.bf16.msra.mxu0 %v1568_v25  ;;  %v209_v41 = vpack.c.bf16 %v199_v40, %v198_v39 }
  0x9f   :  { %1402 = vmatprep.subr.bf16.mxu0 %v1569_v48 }
  0xa0   :  { %479 = vmatmul.mubr.bf16.gmra.mxu0 %v206_v30  ;;  %592 = vmatmul.mubr.bf16.gmra.mxu1 %v206_v30 }
  0xa1   :  { %488 = vmatprep.mubr.bf16.mxu0 %v1615_v1  ;;  %601 = vmatprep.mubr.bf16.mxu1 %v1615_v1  ;;  %v200_v42 = vld [vmem:[#allocation2 + $0x60] sm:$0xff]  ;;  %v201_v43 = vld [vmem:[#allocation2 + $0x68] sm:$0xff] }
  0xa2   :  { %v210_v44 = vpack.c.bf16 %v201_v43, %v200_v42  ;;  %1403 = vmatpush3.bf16.msra.mxu0 %v1569_v48 }
  0xa3   :  { %1404 = vmatprep.subr.bf16.mxu0 %v1570_v49 }
  0xa5   :  { %v202_v45 = vld [vmem:[#allocation2 + $0x70] sm:$0xff]  ;;  %v203_v46 = vld [vmem:[#allocation2 + $0x78] sm:$0xff] }
  0xa6   :  { %v211_v47 = vpack.c.bf16 %v203_v46, %v202_v45  ;;  %1405 = vmatpush3.bf16.msra.mxu0 %v1570_v49 }
  0xa7   :  { %1406 = vmatprep.subr.bf16.mxu0 %v1571_v50 }
  0xa8   :  { %489 = vmatmul.mubr.bf16.gmra.mxu0 %v207_v35  ;;  %602 = vmatmul.mubr.bf16.gmra.mxu1 %v207_v35 }
  0xa9   :  { %498 = vmatprep.mubr.bf16.mxu0 %v1615_v1  ;;  %611 = vmatprep.mubr.bf16.mxu1 %v1615_v1 }
  0xaa   :  { %1407 = vmatpush3.bf16.msra.mxu0 %v1571_v50 }
  0xab   :  { %1408 = vmatprep.subr.bf16.mxu0 %v1572_v51 }
  0xae   :  { %1409 = vmatpush3.bf16.msra.mxu0 %v1572_v51 }
  0xb0   :  { %499 = vmatmul.mubr.bf16.gmra.mxu0 %v208_v38  ;;  %612 = vmatmul.mubr.bf16.gmra.mxu1 %v208_v38 }
  0xb1   :  { %508 = vmatprep.mubr.bf16.mxu0 %v1615_v1  ;;  %621 = vmatprep.mubr.bf16.mxu1 %v1615_v1 }
  0xb8   :  { %509 = vmatmul.mubr.bf16.gmra.mxu0 %v209_v41  ;;  %622 = vmatmul.mubr.bf16.gmra.mxu1 %v209_v41 }
  0xb9   :  { %518 = vmatprep.mubr.bf16.mxu0 %v1615_v1  ;;  %631 = vmatprep.mubr.bf16.mxu1 %v1615_v1 }
  0xc0   :  { %519 = vmatmul.mubr.bf16.gmra.mxu0 %v210_v44  ;;  %632 = vmatmul.mubr.bf16.gmra.mxu1 %v210_v44 }
  0xc1   :  { %528 = vmatprep.mubr.bf16.mxu0 %v1615_v1  ;;  %641 = vmatprep.mubr.bf16.mxu1 %v1615_v1  ;;  %v1575_v1 = vld [vmem:[#allocation4 + $0x7c] ss:$12 sps:$4 sm:$0xff]  }
  0xc2   :  { %1430 = vmatprep.subr.bf16.mxu1 %v1575_v1 }
  0xc3   :  { %1431 = vmatpush3.bf16.msra.mxu1 %v1575_v1 }
  0xc4   :  { %1432 = vmatprep.subr.bf16.mxu1 %v1576_v54 }
  0xc7   :  { %1433 = vmatpush3.bf16.msra.mxu1 %v1576_v54 }
  0xc8   :  { %529 = vmatmul.mubr.bf16.gmra.mxu0 %v211_v47  ;;  %642 = vmatmul.mubr.bf16.gmra.mxu1 %v211_v47 }
  0xc9   :  { %1434 = vmatprep.subr.bf16.mxu1 %v1577_v55 }
  0xcb   :  { %1435 = vmatpush3.bf16.msra.mxu1 %v1577_v55 }
 0x150   :  { %v460_v61 = vpop.f32.mrf.mxu0 }
 0x151   :  { %v461_v63 = vadd.f32 %v460_v61, %v1942_v60 }
 0x152   :  { %v1944_v62 = vpop.f32.mrf.mxu0 }
 0x153   :  { %v652_v5 = vmax.f32 %v461_v63, 0.0 }
 0x154   :  { %v464_v2 = vpop.f32.mrf.mxu0 }
 0x155   :  { %v465_v3 = vadd.f32 %v464_v2, %v1942_v60 }
 0x156   :  { %v1948_v4 = vpop.f32.mrf.mxu0 }
 0x157   :  { %v653_v6 = vmax.f32 %v465_v3, 0.0 }
 0x158   :  { %v470_v7 = vpop.f32.mrf.mxu0 }
 0x159   :  { %v684_v8 = vpack.c.bf16 %v653_v6, %v652_v5  ;;  %v471_v10 = vadd.f32 %v470_v7, %v1942_v60 }
 0x15a   :  { %v1950_v9 = vpop.f32.mrf.mxu0 }
 0x15b   :  { %1410 = vmatprep.mubr.bf16.mxu0 %v684_v8  ;;  %v654_v14 = vmax.f32 %v471_v10, 0.0 }
 0x15c   :  { %v474_v11 = vpop.f32.mrf.mxu0 }
 0x15d   :  { %v475_v12 = vadd.f32 %v474_v11, %v1942_v60 }
 0x15e   :  { %v1954_v13 = vpop.f32.mrf.mxu0 }
 0x15f   :  { %v655_v15 = vmax.f32 %v475_v12, 0.0 }
 0x160   :  { %v480_v16 = vpop.f32.mrf.mxu0 }
 0x161   :  { %v685_v17 = vpack.c.bf16 %v655_v15, %v654_v14  ;;  %v481_v19 = vadd.f32 %v480_v16, %v1942_v60  ;;  %v1578_v14 = vld [vmem:[#allocation4 + $0x34] ss:$12 sps:$4 sm:$0xff]   ;;  %v1579_v15 = vld [vmem:[#allocation4 + $0x1c] ss:$12 sps:$4 sm:$0xff]   ;;  %v1580_v16 = vld [vmem:[#allocation4 + $0x4] ss:$12 sps:$4 sm:$0xff]  }
 0x162   :  { %v1956_v18 = vpop.f32.mrf.mxu0  ;;  %1436 = vmatprep.subr.bf16.mxu1 %v1578_v14 }
 0x163   :  { %1411 = vmatmul.mubr.bf16.vlgmr.msra.gmra.mxu0 %v685_v17  ;;  %v656_v23 = vmax.f32 %v481_v19, 0.0  ;;  %1437 = vmatpush3.bf16.msra.mxu1 %v1578_v14  ;;  %v1581_v17 = vld [vmem:[#allocation4 + $0xb0] ss:$12 sps:$4 sm:$0xff]   ;;  %v1582_v19 = vld [vmem:[#allocation4 + $0x98] ss:$12 sps:$4 sm:$0xff]  }
 0x164   :  { %v484_v20 = vpop.f32.mrf.mxu0  ;;  %1438 = vmatprep.subr.bf16.mxu1 %v1579_v15  ;;  %1458 = vmatprep.subr.bf16.mxu0 %v1581_v17 }
 0x165   :  { %v485_v21 = vadd.f32 %v484_v20, %v1942_v60  ;;  %1459 = vmatpush3.bf16.msra.mxu0 %v1581_v17  ;;  %v1584_v20 = vld [vmem:[#allocation4 + $0x68] ss:$12 sps:$4 sm:$0xff]  }
 0x166   :  { %v1960_v22 = vpop.f32.mrf.mxu0  ;;  %1460 = vmatprep.subr.bf16.mxu0 %v1582_v19 }
 0x167   :  { %v657_v24 = vmax.f32 %v485_v21, 0.0  ;;  %1439 = vmatpush3.bf16.msra.mxu1 %v1579_v15  ;;  %v1585_v21 = vld [vmem:[#allocation4 + $0x50] ss:$12 sps:$4 sm:$0xff]  }
 0x168   :  { %v490_v25 = vpop.f32.mrf.mxu0  ;;  %1440 = vmatprep.subr.bf16.mxu1 %v1580_v16 }
 0x169   :  { %v686_v26 = vpack.c.bf16 %v657_v24, %v656_v23  ;;  %v491_v28 = vadd.f32 %v490_v25, %v1942_v60  ;;  %1461 = vmatpush3.bf16.msra.mxu0 %v1582_v19  ;;  %v252_v23 = vsub.s32 1, %v1933_v57 }
 0x16a   :  { %v1962_v27 = vpop.f32.mrf.mxu0 }
 0x16b   :  { %1414 = vmatprep.mubr.bf16.mxu0 %v686_v26  ;;  %v658_v32 = vmax.f32 %v491_v28, 0.0  ;;  %1441 = vmatpush3.bf16.msra.mxu1 %v1580_v16  ;;  %v1995_v25 = vrot.slane %v1939_v59, %v252_v23 }
 0x16c   :  { %v494_v29 = vpop.f32.mrf.mxu0  ;;  %1490 = vmatprep.subr.bf16.mxu1 %v1614_v0 }
 0x16d   :  { %v495_v30 = vadd.f32 %v494_v29, %v1942_v60  ;;  %v473_v28 = vadd.f32 %v1950_v9, %v1995_v25 }
 0x16e   :  { %v1966_v31 = vpop.f32.mrf.mxu0 }
 0x16f   :  { %v659_v33 = vmax.f32 %v495_v30, 0.0  ;;  %v463_v30 = vadd.f32 %v1944_v62, %v1995_v25 }
 0x170   :  { %v500_v34 = vpop.f32.mrf.mxu0 }
 0x171   :  { %v687_v35 = vpack.c.bf16 %v659_v33, %v658_v32  ;;  %v501_v37 = vadd.f32 %v500_v34, %v1942_v60  ;;  %v477_v32 = vadd.f32 %v1954_v13, %v1995_v25  ;;  %v493_v13 = vadd.f32 %v1962_v27, %v1995_v25 }
 0x172   :  { %v1968_v36 = vpop.f32.mrf.mxu0 }
 0x173   :  { %1415 = vmatmul.mubr.bf16.gmra.mxu0 %v687_v35  ;;  %v660_v41 = vmax.f32 %v501_v37, 0.0  ;;  %v467_v35 = vadd.f32 %v1948_v4, %v1995_v25  ;;  %v483_v4 = vadd.f32 %v1956_v18, %v1995_v25 }
 0x174   :  { %v504_v38 = vpop.f32.mrf.mxu0 }
 0x175   :  { %v505_v39 = vadd.f32 %v504_v38, %v1942_v60 }
 0x176   :  { %v1972_v40 = vpop.f32.mrf.mxu0 }
 0x177   :  { %v661_v42 = vmax.f32 %v505_v39, 0.0  ;;  %v507_v14 = vadd.f32 %v1972_v40, %v1995_v25 }
 0x178   :  { %v510_v43 = vpop.f32.mrf.mxu0 }
 0x179   :  { %v688_v44 = vpack.c.bf16 %v661_v42, %v660_v41  ;;  %v511_v46 = vadd.f32 %v510_v43, %v1942_v60 }
 0x17a   :  { %v1974_v45 = vpop.f32.mrf.mxu0 }
 0x17b   :  { %1418 = vmatprep.mubr.bf16.mxu0 %v688_v44  ;;  %v662_v50 = vmax.f32 %v511_v46, 0.0 }
 0x17c   :  { %v514_v47 = vpop.f32.mrf.mxu0 }
 0x17d   :  { %v515_v48 = vadd.f32 %v514_v47, %v1942_v60 }
 0x17e   :  { %v1978_v49 = vpop.f32.mrf.mxu0 }
 0x17f   :  { %v663_v51 = vmax.f32 %v515_v48, 0.0 }
 0x180   :  { %v520_v52 = vpop.f32.mrf.mxu0 }
 0x181   :  { %v689_v53 = vpack.c.bf16 %v663_v51, %v662_v50  ;;  %v521_v54 = vadd.f32 %v520_v52, %v1942_v60  ;;  %v497_v50 = vadd.f32 %v1966_v31, %v1995_v25  ;;  %v513_v31 = vadd.f32 %v1974_v45, %v1995_v25 }
 0x182   :  { %v1980_v1 = vpop.f32.mrf.mxu0 }
 0x183   :  { %1419 = vmatmul.mubr.bf16.gmra.mxu0 %v689_v53  ;;  %v664_v61 = vmax.f32 %v521_v54, 0.0  ;;  %v487_v53 = vadd.f32 %v1960_v22, %v1995_v25  ;;  %v503_v22 = vadd.f32 %v1968_v36, %v1995_v25 }
 0x184   :  { %v524_v55 = vpop.f32.mrf.mxu0 }
 0x185   :  { %v525_v56 = vadd.f32 %v524_v55, %v1942_v60 }
 0x186   :  { %v1984_v58 = vpop.f32.mrf.mxu0 }
 0x187   :  { %v665_v63 = vmax.f32 %v525_v56, 0.0 }
 0x188   :  { %v530_v2 = vpop.f32.mrf.mxu0 }
 0x189   :  { %v690_v3 = vpack.c.bf16 %v665_v63, %v664_v61  ;;  %v531_v6 = vadd.f32 %v530_v2, %v1942_v60 }
 0x18a   :  { %v1986_v5 = vpop.f32.mrf.mxu0 }
 0x18b   :  { %1422 = vmatprep.mubr.bf16.mxu0 %v690_v3  ;;  %v666_v10 = vmax.f32 %v531_v6, 0.0 }
 0x18c   :  { %v534_v7 = vpop.f32.mrf.mxu0 }
 0x18d   :  { %v535_v8 = vadd.f32 %v534_v7, %v1942_v60  ;;  %v1583_v60 = vld [vmem:[#allocation4 + $0x80] ss:$12 sps:$4 sm:$0xff]  }
 0x18e   :  { %1462 = vmatprep.subr.bf16.mxu0 %v1583_v60  ;;  %v1992_v24 = vpop.f32.mrf.mxu0 }
 0x18f   :  { %v667_v11 = vmax.f32 %v535_v8, 0.0  ;;  %1463 = vmatpush3.bf16.msra.mxu0 %v1583_v60  ;;  %v537_v40 = vadd.f32 %v1992_v24, %v1995_v25  ;;  %v1586_v24 = vld [vmem:[#allocation4 + $0x38] ss:$12 sps:$4 sm:$0xff]  }
 0x190   :  { %1464 = vmatprep.subr.bf16.mxu0 %v1584_v20 }
 0x191   :  { %v691_v12 = vpack.c.bf16 %v667_v11, %v666_v10  ;;  %v517_v10 = vadd.f32 %v1978_v49, %v1995_v25  ;;  %v523_v49 = vadd.f32 %v1980_v1, %v1995_v25 }
 0x193   :  { %1423 = vmatmul.mubr.bf16.gmra.mxu0 %v691_v12 }
 0x194   :  { %1465 = vmatpush3.bf16.msra.mxu0 %v1584_v20 }
 0x195   :  { %1466 = vmatprep.subr.bf16.mxu0 %v1585_v21 }
 0x198   :  { %1467 = vmatpush3.bf16.msra.mxu0 %v1585_v21 }
 0x199   :  { %1468 = vmatprep.subr.bf16.mxu0 %v1586_v24 }
 0x19c   :  { %1469 = vmatpush3.bf16.msra.mxu0 %v1586_v24 }
 0x223   :  { %v1412_v26 = vpop.f32.mrf.mxu0 }
 0x224   :  { %v783_v33 = vadd.f32 %v1412_v26, %v473_v28 }
 0x225   :  { %v774_v29 = vpop.f32.mrf.mxu0 }
 0x226   :  { %v775_v37 = vadd.f32 %v774_v29, %v463_v30  ;;  %v839_v41 = vmax.f32 %v783_v33, 0.0  ;;  %v533_v29 = vadd.f32 %v1986_v5, %v1995_v25  ;;  %v1587_v5 = vld [vmem:[#allocation4 + $0x20] ss:$12 sps:$4 sm:$0xff]  }
 0x227   :  { %v1413_v34 = vpop.f32.mrf.mxu0  ;;  %1470 = vmatprep.subr.bf16.mxu0 %v1587_v5 }
 0x228   :  { %v786_v38 = vadd.f32 %v1413_v34, %v477_v32  ;;  %v837_v44 = vmax.f32 %v775_v37, 0.0  ;;  %v527_v32 = vadd.f32 %v1984_v58, %v1995_v25  ;;  %1471 = vmatpush3.bf16.msra.mxu0 %v1587_v5  ;;  %v1588_v58 = vld [vmem:[#allocation4 + $0x8] ss:$12 sps:$4 sm:$0xff]  }
 0x229   :  { %v777_v39 = vpop.f32.mrf.mxu0  ;;  %1472 = vmatprep.subr.bf16.mxu0 %v1588_v58 }
 0x22a   :  { %v840_v42 = vmax.f32 %v786_v38, 0.0  ;;  %v778_v43 = vadd.f32 %v777_v39, %v467_v35 }
 0x22c   :  { %v870_v9 = vpack.c.bf16 %v840_v42, %v839_v41  ;;  %v838_v46 = vmax.f32 %v778_v43, 0.0  ;;  %1473 = vmatpush3.bf16.msra.mxu0 %v1588_v58 }
 0x22e   :  { %v869_v47 = vpack.c.bf16 %v838_v46, %v837_v44 }
 0x230   :  { %1442 = vmatprep.mubr.bf16.mxu1 %v869_v47 }
 0x231   :  { %1443 = vmatmul.mubr.bf16.vlgmr.msra.gmra.mxu1 %v870_v9  ;;  %v573_v9 = vpop.f32.mrf.mxu1 }
 0x233   :  { %v1416_v62 = vpop.f32.mrf.mxu0  ;;  %v2029_v46 = vpop.f32.mrf.mxu1 }
 0x234   :  { %v799_v51 = vadd.f32 %v1416_v62, %v493_v13 }
 0x235   :  { %v790_v48 = vpop.f32.mrf.mxu0  ;;  %v577_v25 = vpop.f32.mrf.mxu1 }
 0x236   :  { %v791_v54 = vadd.f32 %v790_v48, %v483_v4  ;;  %v843_v61 = vmax.f32 %v799_v51, 0.0 }
 0x237   :  { %v1417_v52 = vpop.f32.mrf.mxu0  ;;  %v2031_v47 = vpop.f32.mrf.mxu1 }
 0x238   :  { %v802_v55 = vadd.f32 %v1417_v52, %v497_v50  ;;  %v841_v3 = vmax.f32 %v791_v54, 0.0 }
 0x239   :  { %v793_v56 = vpop.f32.mrf.mxu0  ;;  %v583_v62 = vpop.f32.mrf.mxu1 }
 0x23a   :  { %v844_v63 = vmax.f32 %v802_v55, 0.0  ;;  %v794_v2 = vadd.f32 %v793_v56, %v487_v53 }
 0x23b   :  { %v2033_v13 = vpop.f32.mrf.mxu1 }
 0x23c   :  { %v872_v27 = vpack.c.bf16 %v844_v63, %v843_v61  ;;  %v842_v6 = vmax.f32 %v794_v2, 0.0 }
 0x23d   :  { %v587_v48 = vpop.f32.mrf.mxu1 }
 0x23e   :  { %v871_v7 = vpack.c.bf16 %v842_v6, %v841_v3 }
 0x23f   :  { %v2035_v4 = vpop.f32.mrf.mxu1 }
 0x240   :  { %1446 = vmatprep.mubr.bf16.mxu1 %v871_v7 }
 0x241   :  { %1447 = vmatmul.mubr.bf16.gmra.mxu1 %v872_v27  ;;  %v593_v50 = vpop.f32.mrf.mxu1 }
 0x243   :  { %v1420_v18 = vpop.f32.mrf.mxu0  ;;  %v2037_v51 = vpop.f32.mrf.mxu1 }
 0x244   :  { %v815_v11 = vadd.f32 %v1420_v18, %v513_v31 }
 0x245   :  { %v806_v8 = vpop.f32.mrf.mxu0  ;;  %v597_v52 = vpop.f32.mrf.mxu1 }
 0x246   :  { %v807_v15 = vadd.f32 %v806_v8, %v503_v22  ;;  %v847_v19 = vmax.f32 %v815_v11, 0.0 }
 0x247   :  { %v1421_v12 = vpop.f32.mrf.mxu0  ;;  %v2039_v53 = vpop.f32.mrf.mxu1 }
 0x248   :  { %v818_v16 = vadd.f32 %v1421_v12, %v517_v10  ;;  %v845_v21 = vmax.f32 %v807_v15, 0.0 }
 0x249   :  { %v809_v17 = vpop.f32.mrf.mxu0  ;;  %v603_v54 = vpop.f32.mrf.mxu1 }
 0x24a   :  { %v848_v60 = vmax.f32 %v818_v16, 0.0  ;;  %v810_v20 = vadd.f32 %v809_v17, %v507_v14  ;;  %v256_v16 = vsub.s32 2, %v1933_v57 }
 0x24b   :  { %v2041_v55 = vpop.f32.mrf.mxu1 }
 0x24c   :  { %v874_v45 = vpack.c.bf16 %v848_v60, %v847_v19  ;;  %v846_v23 = vmax.f32 %v810_v20, 0.0  ;;  %v2071_v19 = vrot.slane %v1939_v59, %v256_v16 }
 0x24d   :  { %v607_v56 = vpop.f32.mrf.mxu1 }
 0x24e   :  { %v873_v26 = vpack.c.bf16 %v846_v23, %v845_v21  ;;  %v574_v21 = vadd.f32 %v573_v9, %v2071_v19  ;;  %v584_v23 = vadd.f32 %v583_v62, %v2071_v19  ;;  %v598_v24 = vadd.f32 %v597_v52, %v2071_v19 }
 0x24f   :  { %v2043_v61 = vpop.f32.mrf.mxu1 }
 0x250   :  { %1450 = vmatprep.mubr.bf16.mxu1 %v873_v26 }
 0x251   :  { %1451 = vmatmul.mubr.bf16.gmra.mxu1 %v874_v45  ;;  %v613_v63 = vpop.f32.mrf.mxu1  ;;  %v588_v45 = vadd.f32 %v587_v48, %v2071_v19 }
 0x253   :  { %v1424_v36 = vpop.f32.mrf.mxu0  ;;  %v2045_v2 = vpop.f32.mrf.mxu1 }
 0x254   :  { %v831_v35 = vadd.f32 %v1424_v36, %v533_v29  ;;  %v578_v36 = vadd.f32 %v577_v25, %v2071_v19 }
 0x255   :  { %v822_v28 = vpop.f32.mrf.mxu0  ;;  %v617_v3 = vpop.f32.mrf.mxu1 }
 0x256   :  { %v823_v33 = vadd.f32 %v822_v28, %v523_v49  ;;  %v851_v43 = vmax.f32 %v831_v35, 0.0 }
 0x257   :  { %v1425_v30 = vpop.f32.mrf.mxu0  ;;  %v2047_v27 = vpop.f32.mrf.mxu1 }
 0x258   :  { %v834_v34 = vadd.f32 %v1425_v30, %v537_v40  ;;  %v849_v41 = vmax.f32 %v823_v33, 0.0 }
 0x259   :  { %v825_v37 = vpop.f32.mrf.mxu0  ;;  %v623_v6 = vpop.f32.mrf.mxu1 }
 0x25a   :  { %v826_v38 = vadd.f32 %v825_v37, %v527_v32  ;;  %v852_v39 = vmax.f32 %v834_v34, 0.0  ;;  %v624_v52 = vadd.f32 %v623_v6, %v2071_v19 }
 0x25b   :  { %v2049_v7 = vpop.f32.mrf.mxu1 }
 0x25c   :  { %v850_v42 = vmax.f32 %v826_v38, 0.0  ;;  %v876_v44 = vpack.c.bf16 %v852_v39, %v851_v43  ;;  %v608_v43 = vadd.f32 %v607_v56, %v2071_v19 }
 0x25d   :  { %v627_v18 = vpop.f32.mrf.mxu1 }
 0x25e   :  { %v875_v1 = vpack.c.bf16 %v850_v42, %v849_v41  ;;  %v594_v42 = vadd.f32 %v593_v50, %v2071_v19 }
 0x25f   :  { %v2051_v31 = vpop.f32.mrf.mxu1 }
 0x260   :  { %1454 = vmatprep.mubr.bf16.mxu1 %v875_v1  ;;  %v604_v1 = vadd.f32 %v603_v54, %v2071_v19  ;;  %v614_v54 = vadd.f32 %v613_v63, %v2071_v19 }
 0x261   :  { %1455 = vmatmul.mubr.bf16.gmra.mxu1 %v876_v44  ;;  %v2053_v8 = vpop.f32.mrf.mxu1 }
 0x262   :  { %v634_v6 = vadd.f32 %v2053_v8, %v2071_v19  ;;  %1506 = vmatprep.mubr.msk.bf16.mxu1 %vm1617_vm2, %v1614_v0 }
 0x263   :  { %v2055_v22 = vpop.f32.mrf.mxu1 }
 0x265   :  { %v2057_v10 = vpop.f32.mrf.mxu1 }
 0x267   :  { %v2059_v11 = vpop.f32.mrf.mxu1 }
 0x269   :  { %v2061_v12 = vpop.f32.mrf.mxu1 }
 0x26b   :  { %v2063_v14 = vpop.f32.mrf.mxu1 }
 0x26d   :  { %v2065_v15 = vpop.f32.mrf.mxu1 }
 0x26f   :  { %v2068_v17 = vpop.f32.mrf.mxu1 }
 0x2f1   :  { %v1444_v60 = vpop.f32.mrf.mxu1 }
 0x2f2   :  { %v968_v40 = vadd.f32 %v1444_v60, %v584_v23  ;;  %v628_v23 = vadd.f32 %v627_v18, %v2071_v19 }
 0x2f3   :  { %v959_v20 = vpop.f32.mrf.mxu1 }
 0x2f4   :  { %v960_v28 = vadd.f32 %v959_v20, %v574_v21  ;;  %v1024_v35 = vmax.f32 %v968_v40, 0.0 }
 0x2f5   :  { %v1445_v26 = vpop.f32.mrf.mxu1 }
 0x2f6   :  { %v971_v49 = vadd.f32 %v1445_v26, %v588_v45  ;;  %v1022_v33 = vmax.f32 %v960_v28, 0.0 }
 0x2f7   :  { %v962_v29 = vpop.f32.mrf.mxu1 }
 0x2f8   :  { %v963_v30 = vadd.f32 %v962_v29, %v578_v36  ;;  %v1025_v32 = vmax.f32 %v971_v49, 0.0  ;;  %v618_v36 = vadd.f32 %v617_v3, %v2071_v19  ;;  %v648_v3 = vadd.f32 %v2065_v15, %v2071_v19 }
 0x2fa   :  { %v1023_v34 = vmax.f32 %v963_v30, 0.0  ;;  %v1055_v38 = vpack.c.bf16 %v1025_v32, %v1024_v35 }
 0x2fc   :  { %v1054_v37 = vpack.c.bf16 %v1023_v34, %v1022_v33 }
 0x2fe   :  { %1474 = vmatprep.mubr.bf16.mxu0 %v1054_v37 }
 0x2ff   :  { %1475 = vmatmul.mubr.bf16.vlgmr.msra.gmra.mxu0 %v1055_v38 }
 0x301   :  { %v1448_v39 = vpop.f32.mrf.mxu1 }
 0x302   :  { %v984_v58 = vadd.f32 %v1448_v39, %v604_v1  ;;  %v644_v39 = vadd.f32 %v2061_v12, %v2071_v19  ;;  %v260_v12 = vsub.s32 3, %v1933_v57 }
 0x303   :  { %v975_v41 = vpop.f32.mrf.mxu1 }
 0x304   :  { %v976_v9 = vadd.f32 %v975_v41, %v594_v42  ;;  %v1028_v20 = vmax.f32 %v984_v58, 0.0  ;;  %v638_v42 = vadd.f32 %v2057_v10, %v2071_v19  ;;  %v261_v10 = vrot.slane %v1939_v59, %v260_v12 }
 0x305   :  { %v1449_v44 = vpop.f32.mrf.mxu1 }
 0x306   :  { %v987_v5 = vadd.f32 %v1449_v44, %v608_v43  ;;  %v1026_v16 = vmax.f32 %v976_v9, 0.0  ;;  %v586_v15 = vadd.f32 %v2033_v13, %v261_v10 }
 0x307   :  { %v978_v25 = vpop.f32.mrf.mxu1 }
 0x308   :  { %v979_v62 = vadd.f32 %v978_v25, %v598_v24  ;;  %v1029_v48 = vmax.f32 %v987_v5, 0.0 }
 0x30a   :  { %v1027_v60 = vmax.f32 %v979_v62, 0.0  ;;  %v1057_v45 = vpack.c.bf16 %v1029_v48, %v1028_v20 }
 0x30c   :  { %v1056_v21 = vpack.c.bf16 %v1027_v60, %v1026_v16  ;;  %v576_v16 = vadd.f32 %v2029_v46, %v261_v10 }
 0x30e   :  { %1478 = vmatprep.mubr.bf16.mxu0 %v1056_v21  ;;  %v590_v21 = vadd.f32 %v2035_v4, %v261_v10  ;;  %v596_v4 = vadd.f32 %v2037_v51, %v261_v10 }
 0x30f   :  { %1479 = vmatmul.mubr.bf16.gmra.mxu0 %v1057_v45 }
 0x311   :  { %v1452_v50 = vpop.f32.mrf.mxu1 }
 0x312   :  { %v1000_v40 = vadd.f32 %v1452_v50, %v624_v52 }
 0x313   :  { %v991_v56 = vpop.f32.mrf.mxu1 }
 0x314   :  { %v992_v28 = vadd.f32 %v991_v56, %v614_v54  ;;  %v1032_v35 = vmax.f32 %v1000_v40, 0.0  ;;  %v580_v56 = vadd.f32 %v2031_v47, %v261_v10 }
 0x315   :  { %v1453_v26 = vpop.f32.mrf.mxu1 }
 0x316   :  { %v1003_v49 = vadd.f32 %v1453_v26, %v628_v23  ;;  %v1030_v33 = vmax.f32 %v992_v28, 0.0 }
 0x317   :  { %v994_v29 = vpop.f32.mrf.mxu1 }
 0x318   :  { %v995_v30 = vadd.f32 %v994_v29, %v618_v36  ;;  %v1033_v32 = vmax.f32 %v1003_v49, 0.0  ;;  %v606_v49 = vadd.f32 %v2041_v55, %v261_v10  ;;  %v610_v29 = vadd.f32 %v2043_v61, %v261_v10 }
 0x319   :  { %v616_v61 = vadd.f32 %v2045_v2, %v261_v10 }
 0x31a   :  { %v1031_v34 = vmax.f32 %v995_v30, 0.0  ;;  %v1059_v38 = vpack.c.bf16 %v1033_v32, %v1032_v35  ;;  %v600_v32 = vadd.f32 %v2039_v53, %v261_v10 }
 0x31c   :  { %v1058_v37 = vpack.c.bf16 %v1031_v34, %v1030_v33 }
 0x31e   :  { %1482 = vmatprep.mubr.bf16.mxu0 %v1058_v37 }
 0x31f   :  { %1483 = vmatmul.mubr.bf16.gmra.mxu0 %v1059_v38 }
 0x321   :  { %v1456_v63 = vpop.f32.mrf.mxu1 }
 0x322   :  { %v1016_v44 = vadd.f32 %v1456_v63, %v644_v39 }
 0x323   :  { %v1007_v18 = vpop.f32.mrf.mxu1 }
 0x324   :  { %v1008_v43 = vadd.f32 %v1007_v18, %v634_v6  ;;  %v1036_v62 = vmax.f32 %v1016_v44, 0.0 }
 0x325   :  { %v1457_v41 = vpop.f32.mrf.mxu1 }
 0x326   :  { %v1019_v1 = vadd.f32 %v1457_v41, %v648_v3  ;;  %v1034_v58 = vmax.f32 %v1008_v43, 0.0  ;;  %v626_v41 = vadd.f32 %v2049_v7, %v261_v10 }
 0x327   :  { %v1010_v24 = vpop.f32.mrf.mxu1 }
 0x328   :  { %v1011_v9 = vadd.f32 %v1010_v24, %v638_v42  ;;  %v1037_v5 = vmax.f32 %v1019_v1, 0.0  ;;  %v630_v42 = vadd.f32 %v2051_v31, %v261_v10  ;;  %v620_v1 = vadd.f32 %v2047_v27, %v261_v10 }
 0x329   :  { %v636_v31 = vadd.f32 %v2055_v22, %v261_v10  ;;  %v1223_v22 = vld [vmem:[%s2139_s5] sm:$0xf] }
 0x32a   :  { %v1035_v25 = vmax.f32 %v1011_v9, 0.0  ;;  %v1061_v48 = vpack.c.bf16 %v1037_v5, %v1036_v62 }
 0x32c   :  { %v1060_v8 = vpack.c.bf16 %v1035_v25, %v1034_v58 }
 0x32e   :  { %1486 = vmatprep.mubr.bf16.mxu0 %v1060_v8 }
 0x32f   :  { %1487 = vmatmul.mubr.bf16.gmra.mxu0 %v1061_v48 }
 0x3bf   :  { %v1476_v19 = vpop.f32.mrf.mxu0 }
 0x3c0   :  { %v1153_v60 = vadd.f32 %v1476_v19, %v586_v15  ;;  %v646_v15 = vadd.f32 %v2063_v14, %v261_v10  ;;  %v650_v19 = vadd.f32 %v2068_v17, %v261_v10 }
 0x3c1   :  { %v1144_v20 = vpop.f32.mrf.mxu0 }
 0x3c2   :  { %v1145_v45 = vadd.f32 %v1144_v20, %v576_v16  ;;  %v1209_v52 = vmax.f32 %v1153_v60, 0.0  ;;  %v640_v60 = vadd.f32 %v2059_v11, %v261_v10  ;;  %v1273_v11 = vstv %s2140_s6 }
 0x3c3   :  { %v1477_v50 = vpop.f32.mrf.mxu0 }
 0x3c4   :  { %v1156_v54 = vadd.f32 %v1477_v50, %v590_v21  ;;  %v1207_v36 = vmax.f32 %v1145_v45, 0.0 }
 0x3c5   :  { %v1147_v23 = vpop.f32.mrf.mxu0 }
 0x3c6   :  { %v1210_v26 = vmax.f32 %v1156_v54, 0.0  ;;  %v1148_v57 = vadd.f32 %v1147_v23, %v580_v56 }
 0x3c8   :  { %v2100_v59 = vpack.c.bf16 %v1210_v26, %v1209_v52  ;;  %v1208_v13 = vmax.f32 %v1148_v57, 0.0 }
 0x3ca   :  { %v2102_v28 = vpack.c.bf16 %v1208_v13, %v1207_v36 }
 0x3cf   :  { %v1480_v46 = vpop.f32.mrf.mxu0 }
 0x3d0   :  { %v1169_v47 = vadd.f32 %v1480_v46, %v606_v49 }
 0x3d1   :  { %v1160_v40 = vpop.f32.mrf.mxu0 }
 0x3d2   :  { %v1161_v33 = vadd.f32 %v1160_v40, %v596_v4  ;;  %v1213_v37 = vmax.f32 %v1169_v47, 0.0 }
 0x3d3   :  { %v1481_v30 = vpop.f32.mrf.mxu0 }
 0x3d4   :  { %v1172_v34 = vadd.f32 %v1481_v30, %v610_v29  ;;  %v1211_v18 = vmax.f32 %v1161_v33, 0.0 }
 0x3d5   :  { %v1163_v35 = vpop.f32.mrf.mxu0 }
 0x3d6   :  { %v1214_v38 = vmax.f32 %v1172_v34, 0.0  ;;  %v1164_v63 = vadd.f32 %v1163_v35, %v600_v32 }
 0x3d8   :  { %v1227_v6 = vpack.c.bf16 %v1214_v38, %v1213_v37  ;;  %v1212_v3 = vmax.f32 %v1164_v63, 0.0 }
 0x3da   :  { %v1226_v39 = vpack.c.bf16 %v1212_v3, %v1211_v18 }
 0x3df   :  { %v1484_v55 = vpop.f32.mrf.mxu0 }
 0x3e0   :  { %v1185_v43 = vadd.f32 %v1484_v55, %v626_v41 }
 0x3e1   :  { %v1176_v51 = vpop.f32.mrf.mxu0 }
 0x3e2   :  { %v1177_v44 = vadd.f32 %v1176_v51, %v616_v61  ;;  %v1217_v5 = vmax.f32 %v1185_v43, 0.0 }
 0x3e3   :  { %v1485_v53 = vpop.f32.mrf.mxu0 }
 0x3e4   :  { %v1188_v24 = vadd.f32 %v1485_v53, %v630_v42  ;;  %v1215_v62 = vmax.f32 %v1177_v44, 0.0 }
 0x3e5   :  { %v1179_v9 = vpop.f32.mrf.mxu0 }
 0x3e6   :  { %v1218_v58 = vmax.f32 %v1188_v24, 0.0  ;;  %v1180_v25 = vadd.f32 %v1179_v9, %v620_v1 }
 0x3e8   :  { %v1229_v8 = vpack.c.bf16 %v1218_v58, %v1217_v5  ;;  %v1216_v48 = vmax.f32 %v1180_v25, 0.0 }
 0x3ea   :  { %v1228_v12 = vpack.c.bf16 %v1216_v48, %v1215_v62 }
 0x3ef   :  { %v1488_v7 = vpop.f32.mrf.mxu0 }
 0x3f0   :  { %v1201_v16 = vadd.f32 %v1488_v7, %v646_v15 }
 0x3f1   :  { %v1192_v2 = vpop.f32.mrf.mxu0 }
 0x3f2   :  { %v1193_v20 = vadd.f32 %v1192_v2, %v636_v31  ;;  %v1221_v50 = vmax.f32 %v1201_v16, 0.0 }
 0x3f3   :  { %v1489_v27 = vpop.f32.mrf.mxu0 }
 0x3f4   :  { %v1204_v21 = vadd.f32 %v1489_v27, %v650_v19  ;;  %v1219_v23 = vmax.f32 %v1193_v20, 0.0 }
 0x3f5   :  { %v1195_v45 = vpop.f32.mrf.mxu0 }
 0x3f6   :  { %v1222_v56 = vmax.f32 %v1204_v21, 0.0  ;;  %v1196_v54 = vadd.f32 %v1195_v45, %v640_v60 }
 0x3f8   :  { %v1231_v52 = vpack.c.bf16 %v1222_v56, %v1221_v50  ;;  %v1220_v26 = vmax.f32 %v1196_v54, 0.0 }
 0x3fa   :  { %v1230_v57 = vpack.c.bf16 %v1220_v26, %v1219_v23  ;;  %1491 = vmatpush3.bf16.xpose.msra.mxu1 %v1231_v52 }
 0x3fb   :  { %1492 = vmatprep.subr.bf16.mxu1 %v1614_v0 }
 0x402   :  { %1493 = vmatpush3.bf16.xpose.msra.mxu1 %v1230_v57 }
 0x403   :  { %1494 = vmatprep.subr.bf16.mxu1 %v1614_v0 }
 0x40a   :  { %1495 = vmatpush3.bf16.xpose.msra.mxu1 %v1229_v8 }
 0x40b   :  { %1496 = vmatprep.subr.bf16.mxu1 %v1614_v0 }
 0x412   :  { %1497 = vmatpush3.bf16.xpose.msra.mxu1 %v1228_v12 }
 0x413   :  { %1498 = vmatprep.subr.bf16.mxu1 %v1614_v0 }
 0x41a   :  { %1499 = vmatpush3.bf16.xpose.msra.mxu1 %v1227_v6 }
 0x41b   :  { %1500 = vmatprep.subr.bf16.mxu1 %v1614_v0 }
 0x422   :  { %1501 = vmatpush3.bf16.xpose.msra.mxu1 %v1226_v39 }
 0x423   :  { %1502 = vmatprep.subr.bf16.mxu1 %v1614_v0 }
 0x42a   :  { %1503 = vmatpush3.bf16.xpose.msra.mxu1 %v2100_v59 }
 0x42b   :  { %1504 = vmatprep.subr.bf16.mxu1 %v1614_v0 }
 0x432   :  { %1505 = vmatpush3.bf16.xpose.msra.mxu1 %v2102_v28 }
 0x439   :  { %1507 = vmatmul.mubr.bf16.vlgmr.msra.gmra.mxu1 %v1223_v22 }
 0x4f9   :  { %v1266_v14 = vpop.f32.mrf.mxu1 }
 0x4fa   :  { %v1274_v17 = vadd.f32 %v1273_v11, %v1266_v14 }
 0x4fb   :  { %v1508_v10 = vpop.f32.mrf.mxu1 }
 0x4fc   :  { %1275 = vst [vmem:[%s2141_s7] sm:$0x1] %v1274_v17 }
 0x4fd   :  { %v1269_v36 = vpop.f32.mrf.mxu1 }
 0x4ff   :  { %v1509_v0 = vpop.f32.mrf.mxu1 }
 0x500   :  { %1280 = vsyncpa [#allocation5], 1 }

</bundles_post_ra>
